<compile_context>
chip_gen: v6e
topology: v6e:2x2x1
jax: 0.10.0
libtpu: 0.0.40
codegen_flags: <defaults>
</compile_context>

<pallas_src>
import functools

import jax
import jax.numpy as jnp
from jax.experimental import pallas as pl
from jax.experimental.pallas import tpu as pltpu

KH = KW = 3  # depthwise kernel size (stride 1 -> "same" pad = 1 each side)


def _dwconv_block_kernel(x_ref, dw_ref, pwf_ref, shift_ref, mask_ref, o_ref, *,
                         width, matmul_dtype):
    """Fused depthwise 3x3 + folded (pointwise 1x1 + bias + BN) for Nb images.

    x_ref:     (Nb, Cin_p, HW)   images, NCHW with flattened spatial (lanes)
    dw_ref:    (Cin_p, 9)        depthwise weights, taps in lanes
    pwf_ref:   (Cout, Cin_p)     pointwise weights pre-scaled by BN scale
    shift_ref: (Cout, 1)         folded shift = bias*scale + beta - mean*scale
    mask_ref:  (4, HW)           0/1 f32 masks: [w>=1, w<=W-2, h>=1, h<=H-2]
    o_ref:     (Nb, Cout, HW)    output, NCHW with flattened spatial
    """
    nb, cin, hw = x_ref.shape
    cout = o_ref.shape[1]

    # Pack (image, channel) into the sublane axis: Cin_p is padded to a
    # multiple of 8 in the wrapper, so this reshape is layout-free and the
    # depthwise MACs run on fully-occupied vregs when nb*cin >= 8.
    x = x_ref[...].astype(jnp.float32).reshape(nb * cin, hw)

    masks = mask_ref[...]                                   # (4, HW) 0/1 f32
    col_ok = {-1: masks[0:1, :], 0: None, 1: masks[1:2, :]}
    row_ok = {-1: masks[2:3, :], 0: None, 1: masks[3:4, :]}

    dww = dw_ref[...].astype(jnp.float32)                   # (Cin_p, 9)
    w_rows = dww if nb == 1 else jnp.tile(dww, (nb, 1))     # (nb*Cin_p, 9)

    # Depthwise 3x3 "same": 9 taps via static lane rotations (XLU) + VPU MACs.
    # roll(x, -off)[i] == x[i + off]; the wrap at row / image boundaries is
    # exactly the set of outputs zeroed by the boundary masks.
    acc = None
    for kh in range(KH):
        dh = kh - 1
        rsum = None
        for kw in range(KW):
            dwc = kw - 1
            off = dh * width + dwc
            tap = x if off == 0 else pltpu.roll(x, (-off) % hw, axis=1)
            t_idx = kh * KW + kw
            t = tap * w_rows[:, t_idx:t_idx + 1]            # lane-broadcast weight
            if col_ok[dwc] is not None:
                t = t * col_ok[dwc]
            rsum = t if rsum is None else rsum + t
        if row_ok[dh] is not None:
            rsum = rsum * row_ok[dh]
        acc = rsum if acc is None else acc + rsum           # (nb*Cin_p, HW) f32

    # Pointwise 1x1 + bias + BN (eval), all folded: one lane-dense MXU matmul
    # per image (N = HW = 256 lanes) plus a broadcast add.
    pwf = pwf_ref[...].astype(matmul_dtype)                 # (Cout, Cin_p)
    shift = shift_ref[...].astype(jnp.float32)              # (Cout, 1)
    for b in range(nb):
        acc_b = acc[b * cin:(b + 1) * cin, :]               # static sublane slice
        y = jnp.dot(pwf, acc_b.astype(matmul_dtype),
                    preferred_element_type=jnp.float32)     # (Cout, HW)
        o_ref[b] = (y + shift).astype(o_ref.dtype)


def _pick_sub_batch(n, cin_p, cout, hw):
    """Images per grid step: as many as fit a small VMEM budget, but keep
    >= 2 grid steps when N >= 2 so both v7x TensorCores get work."""
    if n <= 1:
        return 1
    budget = 8 * 1024 * 1024                       # well under scoped VMEM
    per_img = (cin_p + cout) * hw * 4 * 2          # in + out, double-buffered
    nb = max(1, min(n // 2, budget // per_img))
    while n % nb:
        nb -= 1
    return max(nb, 1)


@functools.partial(jax.jit, static_argnames=("use_bf16_matmul",))
def depthwise_conv_block(x_nchw, dw_w, pw_w, pw_b, bn_gamma, bn_beta,
                         bn_mean, bn_var, eps=1e-3, use_bf16_matmul=False):
    """x_nchw: (N, Cin, H, W) float32.  Returns (N, Cout, H, W).  Eval-mode BN.

    Set use_bf16_matmul=True on v6e/v7x at production channel counts for
    native-rate MXU; keep False to match the f32 reference bit-for-bit-ish.
    """
    N, Cin, H, W = x_nchw.shape
    Cout = pw_w.shape[0]
    HW = H * W
    cin_p = pl.cdiv(Cin, 8) * 8                    # pad channels to sublane tile

    # Stay in NCHW; flattening spatial is metadata-only (no transpose pass).
    x_flat = x_nchw.reshape(N, Cin, HW)
    if cin_p != Cin:
        x_flat = jnp.pad(x_flat, ((0, 0), (0, cin_p - Cin), (0, 0)))

    # Depthwise weights: (Cin, 1, 3, 3) -> lane-dense (Cin_p, 9) single tile.
    dw = dw_w[:, 0].reshape(Cin, KH * KW)
    if cin_p != Cin:
        dw = jnp.pad(dw, ((0, cin_p - Cin), (0, 0)))

    # Fold pointwise bias + BN (eval) into the pointwise weights and one shift.
    scale = bn_gamma / jnp.sqrt(bn_var + eps)                  # (Cout,)
    pwf = pw_w[:, :, 0, 0] * scale[:, None]                    # (Cout, Cin)
    if cin_p != Cin:
        pwf = jnp.pad(pwf, ((0, 0), (0, cin_p - Cin)))
    shift = (pw_b * scale + bn_beta - bn_mean * scale).reshape(Cout, 1)

    # Precomputed 0/1 boundary masks (grid-invariant input, DMA'd once).
    w_idx = jnp.arange(HW, dtype=jnp.int32) % W
    h_idx = jnp.arange(HW, dtype=jnp.int32) // W
    masks = jnp.stack([w_idx >= 1, w_idx <= W - 2,
                       h_idx >= 1, h_idx <= H - 2]).astype(jnp.float32)

    nb = _pick_sub_batch(N, cin_p, Cout, HW)
    grid_n = N // nb

    kernel = functools.partial(
        _dwconv_block_kernel, width=W,
        matmul_dtype=jnp.bfloat16 if use_bf16_matmul else jnp.float32)

    out_flat = pl.pallas_call(
        kernel,
        out_shape=jax.ShapeDtypeStruct((N, Cout, HW), x_nchw.dtype),
        grid_spec=pltpu.PrefetchScalarGridSpec(
            num_scalar_prefetch=0,
            grid=(grid_n,),
            in_specs=[
                pl.BlockSpec((nb, cin_p, HW), lambda n: (n, 0, 0)),
                pl.BlockSpec((cin_p, KH * KW), lambda n: (0, 0)),
                pl.BlockSpec((Cout, cin_p), lambda n: (0, 0)),
                pl.BlockSpec((Cout, 1), lambda n: (0, 0)),
                pl.BlockSpec((4, HW), lambda n: (0, 0)),
            ],
            out_specs=pl.BlockSpec((nb, Cout, HW), lambda n: (n, 0, 0)),
        ),
        compiler_params=pltpu.CompilerParams(
            dimension_semantics=("parallel",)),
    )(x_flat, dw, pwf, shift, masks)

    return out_flat.reshape(N, Cout, H, W)


def _reference(x_nchw, dw_w, pw_w, pw_b, gamma, beta, mean, var, eps=1e-3):
    """Plain-JAX reference (lax conv) matching the PyTorch forward (eval BN)."""
    Cin = x_nchw.shape[1]
    y = jax.lax.conv_general_dilated(
        x_nchw, dw_w, window_strides=(1, 1), padding=((1, 1), (1, 1)),
        feature_group_count=Cin,
        dimension_numbers=("NCHW", "OIHW", "NCHW"))
    y = jax.lax.conv_general_dilated(
        y, pw_w, window_strides=(1, 1), padding=((0, 0), (0, 0)),
        dimension_numbers=("NCHW", "OIHW", "NCHW"))
    y = y + pw_b[None, :, None, None]
    scale = gamma / jnp.sqrt(var + eps)
    return (y - mean[None, :, None, None]) * scale[None, :, None, None] \
        + beta[None, :, None, None]


if __name__ == "__main__":
    N, Cin, H, W = 2, 4, 16, 16
    Cout = 8

    key = jax.random.PRNGKey(0)
    k = jax.random.split(key, 8)

    x = jax.random.normal(k[0], (N, Cin, H, W), jnp.float32)
    # depthwise weight: PyTorch layout (Cin, 1, 3, 3), groups=Cin, no bias
    dw_w = jax.random.normal(k[1], (Cin, 1, KH, KW), jnp.float32) * 0.1
    # pointwise weight/bias: (Cout, Cin, 1, 1), (Cout,)
    pw_w = jax.random.normal(k[2], (Cout, Cin, 1, 1), jnp.float32) * 0.1
    pw_b = jax.random.normal(k[3], (Cout,), jnp.float32) * 0.1
    # BatchNorm params / running stats (eval mode, eps=1e-3 per norm_cfg)
    gamma = 1.0 + 0.1 * jax.random.normal(k[4], (Cout,), jnp.float32)
    beta = 0.1 * jax.random.normal(k[5], (Cout,), jnp.float32)
    mean = 0.1 * jax.random.normal(k[6], (Cout,), jnp.float32)
    var = jnp.abs(1.0 + 0.1 * jax.random.normal(k[7], (Cout,), jnp.float32))

    out = depthwise_conv_block(x, dw_w, pw_w, pw_b, gamma, beta, mean, var)
    out = jax.block_until_ready(out)

    ref = _reference(x, dw_w, pw_w, pw_b, gamma, beta, mean, var)
    assert out.shape == (N, Cout, H, W)
    assert jnp.allclose(out, ref, atol=1e-4, rtol=1e-4), "mismatch vs reference"

    print("KERNEL_OK")
</pallas_src>

<mosaic_0001>
module attributes {stable_mosaic.version = 11 : i64} {
  func.func @_dwconv_block_kernel(%arg0: i32, %arg1: memref<1x8x256xf32, #tpu.memory_space<vmem>>, %arg2: memref<8x9xf32, #tpu.memory_space<vmem>>, %arg3: memref<8x8xf32, #tpu.memory_space<vmem>>, %arg4: memref<8x1xf32, #tpu.memory_space<vmem>>, %arg5: memref<4x256xf32, #tpu.memory_space<vmem>>, %arg6: memref<1x8x256xf32, #tpu.memory_space<vmem>>) attributes {dimension_semantics = [#tpu.dimension_semantics<parallel>], iteration_bounds = array<i64: 2>, scalar_prefetch = 0 : i64, scratch_operands = 0 : i64, tpu.core_type = #tpu.core_type<tc>, window_params = [{transform_indices = @transform_0, window_bounds = array<i64: 1, 8, 256>}, {pipeline_mode = #tpu.pipeline_mode<synchronous>, transform_indices = @transform_1, window_bounds = array<i64: 8, 9>}, {pipeline_mode = #tpu.pipeline_mode<synchronous>, transform_indices = @transform_2, window_bounds = array<i64: 8, 8>}, {pipeline_mode = #tpu.pipeline_mode<synchronous>, transform_indices = @transform_3, window_bounds = array<i64: 8, 1>}, {pipeline_mode = #tpu.pipeline_mode<synchronous>, transform_indices = @transform_4, window_bounds = array<i64: 4, 256>}, {transform_indices = @transform_5, window_bounds = array<i64: 1, 8, 256>}]} {
    %c0 = arith.constant 0 : index
    %c0_0 = arith.constant 0 : index
    %c0_1 = arith.constant 0 : index
    %0 = vector.load %arg1[%c0, %c0_0, %c0_1] : memref<1x8x256xf32, #tpu.memory_space<vmem>>, vector<1x8x256xf32>
    %1 = vector.shape_cast %0 : vector<1x8x256xf32> to vector<8x256xf32>
    %c0_2 = arith.constant 0 : index
    %c0_3 = arith.constant 0 : index
    %2 = vector.load %arg5[%c0_2, %c0_3] : memref<4x256xf32, #tpu.memory_space<vmem>>, vector<4x256xf32>
    %3 = vector.extract_strided_slice %2 {offsets = [0, 0], sizes = [1, 256], strides = [1, 1]} : vector<4x256xf32> to vector<1x256xf32>
    %4 = vector.extract_strided_slice %2 {offsets = [1, 0], sizes = [1, 256], strides = [1, 1]} : vector<4x256xf32> to vector<1x256xf32>
    %5 = vector.extract_strided_slice %2 {offsets = [2, 0], sizes = [1, 256], strides = [1, 1]} : vector<4x256xf32> to vector<1x256xf32>
    %6 = vector.extract_strided_slice %2 {offsets = [3, 0], sizes = [1, 256], strides = [1, 1]} : vector<4x256xf32> to vector<1x256xf32>
    %c0_4 = arith.constant 0 : index
    %c0_5 = arith.constant 0 : index
    %7 = vector.load %arg2[%c0_4, %c0_5] : memref<8x9xf32, #tpu.memory_space<vmem>>, vector<8x9xf32>
    %c17_i32 = arith.constant 17 : i32
    %8 = tpu.dynamic_rotate %1 by %c17_i32 dim 1 : vector<8x256xf32>, i32 -> vector<8x256xf32>
    %9 = vector.extract_strided_slice %7 {offsets = [0, 0], sizes = [8, 1], strides = [1, 1]} : vector<8x9xf32> to vector<8x1xf32>
    %10 = vector.broadcast %9 : vector<8x1xf32> to vector<8x256xf32>
    %11 = arith.mulf %8, %10 : vector<8x256xf32>
    %12 = vector.broadcast %3 : vector<1x256xf32> to vector<8x256xf32>
    %13 = arith.mulf %11, %12 : vector<8x256xf32>
    %c16_i32 = arith.constant 16 : i32
    %14 = tpu.dynamic_rotate %1 by %c16_i32 dim 1 : vector<8x256xf32>, i32 -> vector<8x256xf32>
    %15 = vector.extract_strided_slice %7 {offsets = [0, 1], sizes = [8, 1], strides = [1, 1]} : vector<8x9xf32> to vector<8x1xf32>
    %16 = vector.broadcast %15 : vector<8x1xf32> to vector<8x256xf32>
    %17 = arith.mulf %14, %16 : vector<8x256xf32>
    %18 = arith.addf %13, %17 : vector<8x256xf32>
    %c15_i32 = arith.constant 15 : i32
    %19 = tpu.dynamic_rotate %1 by %c15_i32 dim 1 : vector<8x256xf32>, i32 -> vector<8x256xf32>
    %20 = vector.extract_strided_slice %7 {offsets = [0, 2], sizes = [8, 1], strides = [1, 1]} : vector<8x9xf32> to vector<8x1xf32>
    %21 = vector.broadcast %20 : vector<8x1xf32> to vector<8x256xf32>
    %22 = arith.mulf %19, %21 : vector<8x256xf32>
    %23 = vector.broadcast %4 : vector<1x256xf32> to vector<8x256xf32>
    %24 = arith.mulf %22, %23 : vector<8x256xf32>
    %25 = arith.addf %18, %24 : vector<8x256xf32>
    %26 = vector.broadcast %5 : vector<1x256xf32> to vector<8x256xf32>
    %27 = arith.mulf %25, %26 : vector<8x256xf32>
    %c1_i32 = arith.constant 1 : i32
    %28 = tpu.dynamic_rotate %1 by %c1_i32 dim 1 : vector<8x256xf32>, i32 -> vector<8x256xf32>
    %29 = vector.extract_strided_slice %7 {offsets = [0, 3], sizes = [8, 1], strides = [1, 1]} : vector<8x9xf32> to vector<8x1xf32>
    %30 = vector.broadcast %29 : vector<8x1xf32> to vector<8x256xf32>
    %31 = arith.mulf %28, %30 : vector<8x256xf32>
    %32 = vector.broadcast %3 : vector<1x256xf32> to vector<8x256xf32>
    %33 = arith.mulf %31, %32 : vector<8x256xf32>
    %34 = vector.extract_strided_slice %7 {offsets = [0, 4], sizes = [8, 1], strides = [1, 1]} : vector<8x9xf32> to vector<8x1xf32>
    %35 = vector.broadcast %34 : vector<8x1xf32> to vector<8x256xf32>
    %36 = arith.mulf %1, %35 : vector<8x256xf32>
    %37 = arith.addf %33, %36 : vector<8x256xf32>
    %c255_i32 = arith.constant 255 : i32
    %38 = tpu.dynamic_rotate %1 by %c255_i32 dim 1 : vector<8x256xf32>, i32 -> vector<8x256xf32>
    %39 = vector.extract_strided_slice %7 {offsets = [0, 5], sizes = [8, 1], strides = [1, 1]} : vector<8x9xf32> to vector<8x1xf32>
    %40 = vector.broadcast %39 : vector<8x1xf32> to vector<8x256xf32>
    %41 = arith.mulf %38, %40 : vector<8x256xf32>
    %42 = vector.broadcast %4 : vector<1x256xf32> to vector<8x256xf32>
    %43 = arith.mulf %41, %42 : vector<8x256xf32>
    %44 = arith.addf %37, %43 : vector<8x256xf32>
    %45 = arith.addf %27, %44 : vector<8x256xf32>
    %c241_i32 = arith.constant 241 : i32
    %46 = tpu.dynamic_rotate %1 by %c241_i32 dim 1 : vector<8x256xf32>, i32 -> vector<8x256xf32>
    %47 = vector.extract_strided_slice %7 {offsets = [0, 6], sizes = [8, 1], strides = [1, 1]} : vector<8x9xf32> to vector<8x1xf32>
    %48 = vector.broadcast %47 : vector<8x1xf32> to vector<8x256xf32>
    %49 = arith.mulf %46, %48 : vector<8x256xf32>
    %50 = vector.broadcast %3 : vector<1x256xf32> to vector<8x256xf32>
    %51 = arith.mulf %49, %50 : vector<8x256xf32>
    %c240_i32 = arith.constant 240 : i32
    %52 = tpu.dynamic_rotate %1 by %c240_i32 dim 1 : vector<8x256xf32>, i32 -> vector<8x256xf32>
    %53 = vector.extract_strided_slice %7 {offsets = [0, 7], sizes = [8, 1], strides = [1, 1]} : vector<8x9xf32> to vector<8x1xf32>
    %54 = vector.broadcast %53 : vector<8x1xf32> to vector<8x256xf32>
    %55 = arith.mulf %52, %54 : vector<8x256xf32>
    %56 = arith.addf %51, %55 : vector<8x256xf32>
    %c239_i32 = arith.constant 239 : i32
    %57 = tpu.dynamic_rotate %1 by %c239_i32 dim 1 : vector<8x256xf32>, i32 -> vector<8x256xf32>
    %58 = vector.extract_strided_slice %7 {offsets = [0, 8], sizes = [8, 1], strides = [1, 1]} : vector<8x9xf32> to vector<8x1xf32>
    %59 = vector.broadcast %58 : vector<8x1xf32> to vector<8x256xf32>
    %60 = arith.mulf %57, %59 : vector<8x256xf32>
    %61 = vector.broadcast %4 : vector<1x256xf32> to vector<8x256xf32>
    %62 = arith.mulf %60, %61 : vector<8x256xf32>
    %63 = arith.addf %56, %62 : vector<8x256xf32>
    %64 = vector.broadcast %6 : vector<1x256xf32> to vector<8x256xf32>
    %65 = arith.mulf %63, %64 : vector<8x256xf32>
    %66 = arith.addf %45, %65 : vector<8x256xf32>
    %c0_6 = arith.constant 0 : index
    %c0_7 = arith.constant 0 : index
    %67 = vector.load %arg3[%c0_6, %c0_7] : memref<8x8xf32, #tpu.memory_space<vmem>>, vector<8x8xf32>
    %c0_8 = arith.constant 0 : index
    %c0_9 = arith.constant 0 : index
    %68 = vector.load %arg4[%c0_8, %c0_9] : memref<8x1xf32, #tpu.memory_space<vmem>>, vector<8x1xf32>
    %cst = arith.constant dense<0.000000e+00> : vector<8x256xf32>
    %69 = tpu.matmul %67, %66, %cst {dimension_numbers = #tpu.dot_dimension_numbers<[1], [0], [0], [1], [0, 0, 1, 1], [], []>} : vector<8x8xf32>, vector<8x256xf32>, vector<8x256xf32> -> vector<8x256xf32>
    %70 = vector.broadcast %68 : vector<8x1xf32> to vector<8x256xf32>
    %71 = arith.addf %69, %70 : vector<8x256xf32>
    %c0_10 = arith.constant 0 : index
    %c0_11 = arith.constant 0 : index
    %c0_12 = arith.constant 0 : index
    %72 = vector.load %arg6[%c0_10, %c0_11, %c0_12] : memref<1x8x256xf32, #tpu.memory_space<vmem>>, vector<1x8x256xf32>
    %73 = vector.shape_cast %72 : vector<1x8x256xf32> to vector<8x256xf32>
    %74 = vector.shape_cast %71 : vector<8x256xf32> to vector<1x8x256xf32>
    tpu.vector_store %arg6[%c0_10, %c0_11, %c0_12], %74 {strides = array<i32>} : memref<1x8x256xf32, #tpu.memory_space<vmem>>, vector<1x8x256xf32>,
    return
  }
  func.func @transform_0(%arg0: i32) -> (i32, i32, i32) {
    %c0_i32 = arith.constant 0 : i32
    %c0_i32_0 = arith.constant 0 : i32
    %c0_i32_1 = arith.constant 0 : i32
    return %arg0, %c0_i32, %c0_i32_0 : i32, i32, i32
  }
  func.func @transform_1(%arg0: i32) -> (i32, i32) {
    %c0_i32 = arith.constant 0 : i32
    %c0_i32_0 = arith.constant 0 : i32
    %c0_i32_1 = arith.constant 0 : i32
    return %c0_i32, %c0_i32_0 : i32, i32
  }
  func.func @transform_2(%arg0: i32) -> (i32, i32) {
    %c0_i32 = arith.constant 0 : i32
    %c0_i32_0 = arith.constant 0 : i32
    %c0_i32_1 = arith.constant 0 : i32
    return %c0_i32, %c0_i32_0 : i32, i32
  }
  func.func @transform_3(%arg0: i32) -> (i32, i32) {
    %c0_i32 = arith.constant 0 : i32
    %c0_i32_0 = arith.constant 0 : i32
    %c0_i32_1 = arith.constant 0 : i32
    return %c0_i32, %c0_i32_0 : i32, i32
  }
  func.func @transform_4(%arg0: i32) -> (i32, i32) {
    %c0_i32 = arith.constant 0 : i32
    %c0_i32_0 = arith.constant 0 : i32
    %c0_i32_1 = arith.constant 0 : i32
    return %c0_i32, %c0_i32_0 : i32, i32
  }
  func.func @transform_5(%arg0: i32) -> (i32, i32, i32) {
    %c0_i32 = arith.constant 0 : i32
    %c0_i32_0 = arith.constant 0 : i32
    %c0_i32_1 = arith.constant 0 : i32
    return %arg0, %c0_i32, %c0_i32_0 : i32, i32, i32
  }
}

</mosaic_0001>

<bundles_post_ra>
// kernel: depthwise_conv_block.1
= control target key start
LH: loop header
LB: loop body
LE: loop exit
PB: predicated region body
PF: predicated region fallthrough
CT: control target
= control target key end

     0   :  { %s691_s18 = smov 0   ;;  %s864_s0 = inlined_call_operand.vmem [shape: f32[2,8,256], index: 0, kind: input, shape index: {}]   ;;  %s865_s1 = inlined_call_operand.vmem [shape: f32[8,9], index: 1, kind: input, shape index: {}]   ;;  %s866_s2 = inlined_call_operand.vmem [shape: f32[8,8], index: 2, kind: input, shape index: {}]   ;;  %s867_s3 = inlined_call_operand.vmem [shape: f32[8,1], index: 3, kind: input, shape index: {}]   ;;  %s868_s4 = inlined_call_operand.vmem [shape: f32[4,256], index: 4, kind: input, shape index: {}]   ;;  %s869_s5 = inlined_call_operand.vmem [shape: f32[2,8,256], index: 5, kind: output, shape index: {}]  }
   0x1 LB: > { %s586_s19 = sadd.s32 4294967295, %s641_s18   ;;  %p590_p0 = scmp.ge.s32.totalorder %s641_s18, 1  ;;  %s641_s18 = sphi %s691_s18, %s15_s18  }
   0x2   : > { %p187_p1 = scmp.lt.s32.totalorder %s641_s18, 3 }
   0x4   : > { %p188_p2 = pnand %p590_p0, %p187_p1 }
   0x5   : > { %p215_p3 = scmp.lt.s32.totalorder (!%p188_p2), %s586_s19, 1  ;;  %s647_s26 = smov (!%p188_p2), 17  }
   0x6   : > { %191 = sbr.rel (%p188_p2) target bundleno = 403 (0x193), region = 40  ;;  %s653_s27 = smov (!%p188_p2), 15  }
   0x7   : > { %s654_s28 = smov (!%p188_p2), 1   ;;  %s655_s29 = smov (!%p188_p2), 16  }
   0x8   : > { %s656_s30 = smov (!%p188_p2), 113   ;;  %s657_s6 = smov (!%p188_p2), 127  }
   0x9   : > { %s658_s7 = smov (!%p188_p2), 112   ;;  %s659_s8 = smov (!%p188_p2), 111  }
   0xb   : > { %v228_v0 = vld [vmem:[%s865_s1] sm:$0xff]  ;;  %v643_v1 = vmov 2   ;;  %v644_v2 = vmov 1   ;;  %s871_s19 = smov (!%p215_p3, %s586_s19), 1  ;;  %v645_v3 = vmov 3   ;;  %v646_v5 = vmov 4  }
   0xc   : > { %627 = vset.pattern.permute.xlu1 %v643_v1  ;;  %626 = vset.pattern.permute.xlu0 %v644_v2  ;;  %s598_s22 = sshll.u32 %s871_s19, 4  ;;  %v648_v6 = vmov 6   ;;  %v649_v8 = vmov 8   ;;  %v650_v9 = vmov 5   ;;  %v651_v10 = vmov 0   ;;  %v448_v12 = vld [vmem:[%s867_s3] sm:$0xff] }
   0xd   : > { %289 = vperm.xlu1 %627, %v228_v0   ;;  %274 = vperm.xlu0 %626, %v228_v0   ;;  %s219_s25 = scalar_lea.vmem %s864_s0, %s598_s22  ;;  %v652_v11 = vmov 7   ;;  %v660_v13 = vmov 0.0   ;;  %v233_v26 = vlaneseq  ;;  %v752_v32 = vld [vmem:[%s868_s4] sm:$0xff]  ;;  %vm454_vm8 = vcmask 64512   ;;  %s224_s17 = scalar_lea.vmem %s869_s5, %s598_s22 }
   0xe   : > { %v710_v4 = vld [vmem:[%s219_s25] sm:$0xff]  ;;  %v713_v7 = vld [vmem:[%s219_s25 + $0x8] sm:$0xff]  ;;  %522 = vmatprep.mubr.f32.mxu0 %v660_v13 }
   0xf   : > { %v247_v28 = vshrl.u32 %v233_v26, 7  ;;  %v756_v39 = vand.u32 127, %v233_v26 }
  0x11   : > { %628 = vset.pattern.permute.xlu1 %v645_v3  ;;  %630 = vset.pattern.permute.xlu0 %v646_v5  ;;  %v248_v31 = vsub.s32 0, %v247_v28  ;;  %v252_v33 = vsub.s32 4, %v247_v28  ;;  %v296_v34 = vsub.s32 1, %v247_v28  ;;  %v300_v35 = vsub.s32 5, %v247_v28 }
  0x12   : > { %344 = vperm.xlu1 %628, %v228_v0   ;;  %229 = vrot.lane.b32.xlu0 %v710_v4, %s647_s26  ;;  %v754_v37 = vsub.s32 2, %v247_v28  ;;  %v322_v38 = vsub.s32 6, %v247_v28  ;;  %vm235_vm0 = vcmp.lt.s32.totalorder %v756_v39, 17  ;;  %vm285_vm1 = vcmp.lt.s32.totalorder %v756_v39, 15 }
  0x13   : > { %v249_v40 = vrot.slane %v752_v32, %v248_v31  ;;  %v253_v42 = vrot.slane %v752_v32, %v252_v33  ;;  %v297_v43 = vrot.slane %v752_v32, %v296_v34  ;;  %v301_v44 = vrot.slane %v752_v32, %v300_v35 }
  0x14   : > { %v763_v46 = vrot.slane %v752_v32, %v322_v38  ;;  %v319_v47 = vrot.slane %v752_v32, %v754_v37  ;;  %vm270_vm2 = vcmp.lt.s32.totalorder %v756_v39, 16  ;;  %vm340_vm3 = vcmp.lt.s32.totalorder %v756_v39, 1 }
  0x15   : > { %v768_v48 = vrot.slane %v249_v40, %v248_v31  ;;  %v771_v49 = vrot.slane %v253_v42, %v248_v31  ;;  %v774_v50 = vrot.slane %v297_v43, %v296_v34  ;;  %v777_v51 = vrot.slane %v301_v44, %v296_v34 }
  0x16   : > { %629 = vset.pattern.permute.xlu1 %v648_v6  ;;  %352 = vperm.xlu0 %630, %v228_v0   ;;  %vm382_vm4 = vcmp.lt.s32.totalorder %v756_v39, 113  ;;  %v333_v54 = vrot.slane %v763_v46, %v754_v37  ;;  %v783_v55 = vrot.slane %v319_v47, %v754_v37  ;;  %vm363_vm5 = vcmp.lt.s32.totalorder %v756_v39, 127 }
  0x17   : > { %386 = vperm.xlu1 %629, %v228_v0   ;;  %vm397_vm6 = vcmp.lt.s32.totalorder %v756_v39, 112  ;;  %vm412_vm7 = vcmp.lt.s32.totalorder %v756_v39, 111  ;;  %v788_v60 = vsub.s32 3, %v247_v28  ;;  %v431_v61 = vsub.s32 7, %v247_v28 }
  0x1a   : > { %633 = vset.pattern.permute.xlu0 %v649_v8 }
  0x1b   : > { %231 = vrot.lane.b32.xlu1 %v713_v7, %s647_s26  ;;  %416 = vperm.xlu0 %633, %v228_v0  }
  0x1c   : > { %631 = vset.pattern.permute.xlu1 %v650_v9 }
  0x1f   : > { %367 = vperm.xlu1 %631, %v228_v0   ;;  %634 = vset.pattern.permute.xlu0 %v651_v10 }
  0x20   : > { %240 = vperm.xlu0 %634, %v228_v0  }
  0x23   : > { %632 = vset.pattern.permute.xlu1 %v652_v11 }
  0x24   : > { %401 = vperm.xlu1 %632, %v228_v0   ;;  %281 = vrot.lane.b32.xlu0 %v710_v4, %s653_s27 }
  0x28   : > { %336 = vrot.lane.b32.xlu0 %v710_v4, %s654_s28  ;;  %266 = vrot.lane.b32.xlu1 %v710_v4, %s655_s29 }
  0x2c   : > { %378 = vrot.lane.b32.xlu0 %v710_v4, %s656_s30  ;;  %268 = vrot.lane.b32.xlu1 %v713_v7, %s655_s29 }
  0x30   : > { %359 = vrot.lane.b32.xlu0 %v710_v4, %s657_s6  ;;  %283 = vrot.lane.b32.xlu1 %v713_v7, %s653_s27 }
  0x34   : > { %393 = vrot.lane.b32.xlu0 %v710_v4, %s658_s7  ;;  %338 = vrot.lane.b32.xlu1 %v713_v7, %s654_s28 }
  0x38   : > { %408 = vrot.lane.b32.xlu0 %v710_v4, %s659_s8  ;;  %380 = vrot.lane.b32.xlu1 %v713_v7, %s656_s30 }
  0x3c   : > { %451 = vperm.xlu0 %634, %v448_v12   ;;  %361 = vrot.lane.b32.xlu1 %v713_v7, %s657_s6 }
  0x40   : > { %395 = vrot.lane.b32.xlu1 %v713_v7, %s658_s7 }
  0x44   : > { %410 = vrot.lane.b32.xlu1 %v713_v7, %s659_s8 }
  0x88   : > { %v733_v14 = vpop.permute.xlu1 %289  ;;  %v735_v15 = vpop.permute.xlu0 %274 }
  0x8c   : > { %v230_v16 = vpop.permute.xlu0 %229 }
  0x8d   : > { %v737_v17 = vpop.permute.xlu1 %344 }
  0x91   : > { %v739_v18 = vpop.permute.xlu0 %352 }
  0x92   : > { %v741_v19 = vpop.permute.xlu1 %386  ;;  %v356_v42 = vmul.f32 %v739_v18, %v713_v7 }
  0x96   : > { %v232_v20 = vpop.permute.xlu1 %231  ;;  %v743_v21 = vpop.permute.xlu0 %416 }
  0x97   : > { %v236_v62 = vsel %vm235_vm0, %v230_v16, %v232_v20  ;;  %v237_v63 = vsel %vm235_vm0, %v232_v20, %v230_v16 }
  0x9a   : > { %v745_v22 = vpop.permute.xlu1 %367 }
  0x9b   : > { %v241_v23 = vpop.permute.xlu0 %240 }
  0x9c   : > { %v243_v2 = vmul.f32 %v241_v23, %v237_v63  ;;  %v244_v3 = vmul.f32 %v241_v23, %v236_v62  ;;  %v432_v23 = vrot.slane %v752_v32, %v431_v61 }
  0x9e   : > { %v264_v28 = vmul.f32 %v768_v48, %v243_v2 }
  0x9f   : > { %v747_v24 = vpop.permute.xlu1 %401  ;;  %v282_v25 = vpop.permute.xlu0 %281 }
  0xa3   : > { %v267_v27 = vpop.permute.xlu1 %266  ;;  %v337_v29 = vpop.permute.xlu0 %336 }
  0xa7   : > { %v269_v30 = vpop.permute.xlu1 %268  ;;  %v379_v41 = vpop.permute.xlu0 %378 }
  0xa8   : > { %v271_v0 = vsel %vm270_vm2, %v267_v27, %v269_v30  ;;  %v272_v1 = vsel %vm270_vm2, %v269_v30, %v267_v27 }
  0xa9   : > { %v277_v13 = vmul.f32 %v735_v15, %v272_v1  ;;  %v278_v16 = vmul.f32 %v735_v15, %v271_v0  ;;  %v265_v15 = vmul.f32 %v771_v49, %v244_v3 }
  0xab   : > { %v284_v36 = vpop.permute.xlu1 %283  ;;  %v360_v52 = vpop.permute.xlu0 %359 }
  0xac   : > { %v286_v56 = vsel %vm285_vm1, %v282_v25, %v284_v36  ;;  %v287_v57 = vsel %vm285_vm1, %v284_v36, %v282_v25  ;;  %v280_v36 = vadd.f32 %v278_v16, %v265_v15 }
  0xad   : > { %v292_v5 = vmul.f32 %v733_v14, %v287_v57  ;;  %v293_v6 = vmul.f32 %v733_v14, %v286_v56  ;;  %v428_v14 = vrot.slane %v752_v32, %v788_v60 }
  0xaf   : > { %v339_v45 = vpop.permute.xlu1 %338  ;;  %v394_v20 = vpop.permute.xlu0 %393  ;;  %v313_v30 = vmul.f32 %v777_v51, %v293_v6  ;;  %v438_v1 = vrot.slane %v428_v14, %v788_v60 }
  0xb0   : > { %v341_v58 = vsel %vm340_vm3, %v337_v29, %v339_v45  ;;  %v342_v59 = vsel %vm340_vm3, %v339_v45, %v337_v29  ;;  %v312_v29 = vmul.f32 %v774_v50, %v292_v5 }
  0xb1   : > { %v347_v9 = vmul.f32 %v737_v17, %v342_v59  ;;  %v348_v10 = vmul.f32 %v737_v17, %v341_v58  ;;  %v315_v57 = vadd.f32 %v313_v30, %v280_v36 }
  0xb3   : > { %v381_v53 = vpop.permute.xlu1 %380  ;;  %v349_v32 = vmul.f32 %v347_v9, %v768_v48  ;;  %v350_v33 = vmul.f32 %v348_v10, %v771_v49  ;;  %v409_v47 = vpop.permute.xlu0 %408 }
  0xb4   : > { %v383_v25 = vsel %vm382_vm4, %v379_v41, %v381_v53  ;;  %v384_v17 = vsel %vm382_vm4, %v381_v53, %v379_v41  ;;  %v355_v41 = vmul.f32 %v739_v18, %v710_v4 }
  0xb5   : > { %v389_v38 = vmul.f32 %v741_v19, %v383_v25  ;;  %v390_v40 = vmul.f32 %v741_v19, %v384_v17  ;;  %v358_v7 = vadd.f32 %v356_v42, %v350_v33 }
  0xb6   : > { %v357_v58 = vadd.f32 %v355_v41, %v349_v32 }
  0xb7   : > { %v362_v8 = vpop.permute.xlu1 %361  ;;  %v391_v18 = vmul.f32 %v389_v38, %v768_v48  ;;  %v392_v59 = vmul.f32 %v390_v40, %v771_v49  ;;  %v335_v48 = vmul.f32 %v333_v54, %v315_v57  ;;  %v452_v37 = vpop.permute.xlu0 %451 }
  0xb8   : > { %v364_v11 = vsel %vm363_vm5, %v360_v52, %v362_v8  ;;  %v365_v12 = vsel %vm363_vm5, %v362_v8, %v360_v52 }
  0xb9   : > { %v370_v26 = vmul.f32 %v745_v22, %v364_v11  ;;  %v371_v27 = vmul.f32 %v745_v22, %v365_v12  ;;  %v279_v22 = vadd.f32 %v277_v13, %v264_v28 }
  0xbb   : > { %v396_v31 = vpop.permute.xlu1 %395  ;;  %v372_v43 = vmul.f32 %v370_v26, %v774_v50  ;;  %v373_v44 = vmul.f32 %v371_v27, %v777_v51  ;;  %v314_v45 = vadd.f32 %v312_v29, %v279_v22 }
  0xbc   : > { %v398_v34 = vsel %vm397_vm6, %v394_v20, %v396_v31  ;;  %v399_v35 = vsel %vm397_vm6, %v396_v31, %v394_v20 }
  0xbd   : > { %v404_v52 = vmul.f32 %v747_v24, %v398_v34  ;;  %v405_v53 = vmul.f32 %v747_v24, %v399_v35  ;;  %v375_v63 = vadd.f32 %v373_v44, %v358_v7  ;;  %v442_v24 = vrot.slane %v432_v23, %v788_v60 }
  0xbe   : > { %v374_v0 = vadd.f32 %v372_v43, %v357_v58 }
  0xbf   : > { %v411_v56 = vpop.permute.xlu1 %410  ;;  %v406_v2 = vadd.f32 %v404_v52, %v391_v18  ;;  %v407_v3 = vadd.f32 %v405_v53, %v392_v59  ;;  %v377_v8 = vadd.f32 %v375_v63, %v335_v48 }
  0xc0   : > { %v413_v19 = vsel %vm412_vm7, %v409_v47, %v411_v56  ;;  %v414_v4 = vsel %vm412_vm7, %v411_v56, %v409_v47 }
  0xc1   : > { %v419_v61 = vmul.f32 %v743_v21, %v413_v19  ;;  %v420_v62 = vmul.f32 %v743_v21, %v414_v4  ;;  %v334_v21 = vmul.f32 %v783_v55, %v314_v45 }
  0xc3   : > { %v421_v39 = vmul.f32 %v419_v61, %v774_v50  ;;  %v422_v5 = vmul.f32 %v420_v62, %v777_v51  ;;  %v376_v10 = vadd.f32 %v374_v0, %v334_v21  ;;  %v447_v50 = vld [vmem:[%s866_s2] sm:$0xff] }
  0xc5   : > { %v424_v49 = vadd.f32 %v422_v5, %v407_v3  ;;  %v423_v6 = vadd.f32 %v421_v39, %v406_v2 }
  0xc7   : > { %v444_v9 = vmul.f32 %v442_v24, %v424_v49  ;;  %v443_v11 = vmul.f32 %v438_v1, %v423_v6 }
  0xc9   : > { %v446_v60 = vadd.f32 %v444_v9, %v377_v8  ;;  %v445_v12 = vadd.f32 %v443_v11, %v376_v10 }
  0xcb   : > { %488 = vmatprep.subr.mxu0 %v446_v60 }
  0xcc   : > { %489 = vmatpush1.msra.mxu0 %v445_v12 }
  0xcd   : > { %595 = vmatmul.mubr.msk.f32.vlgmr.msra.gmra.mxu0 %vm454_vm8, %v447_v50 }
 0x18d   : > { %v524_v46 = vpop.f32.mrf.mxu0 }
 0x18e   : > { %v525_v51 = vadd.f32 %v524_v46, %v452_v37 }
 0x18f   : > { %v526_v54 = vpop.f32.mrf.mxu0 }
 0x190   : > { %529 = vst [vmem:[%s224_s17] sm:$0xff] %v525_v51  ;;  %v527_v55 = vadd.f32 %v526_v54, %v452_v37 }
 0x192   : > { %530 = vst [vmem:[%s224_s17 + $0x8] sm:$0xff] %v527_v55 }
 0x193 PF: > { %s15_s18 = sadd.s32 1, %s641_s18  }
 0x194   : > { %p12_p4 = scmp.ge.s32.totalorder %s15_s18, 4  }
 0x196   :  { %14 = sbr.rel (!%p12_p4) target bundleno = 1 (0x1), region = 70 }

</bundles_post_ra>
